<compile_context>
chip_gen: v7x
topology: tpu7x:2x2x1
jax: 0.10.0
libtpu: 0.0.40
codegen_flags: <defaults>
</compile_context>

<pallas_src>
import jax
import jax.numpy as jnp
from jax.experimental import pallas as pl
from jax.experimental.pallas import tpu as pltpu


def _round_up(x, m):
    return (x + m - 1) // m * m


def _lstm_core_kernel(x_ref, h_ref, c_ref, wx_ref, wh_ref, nh_ref, nc_ref):
    TN = nh_ref.shape[-1]

    # Two bf16 MXU matmuls with f32 accumulation.  The bias is already folded
    # into wh's last live row (h operand has a trailing 1-column), so no
    # separate bias operand / broadcast add is needed.
    z = (jnp.dot(x_ref[...], wx_ref[0], preferred_element_type=jnp.float32)
         + jnp.dot(h_ref[...], wh_ref[0], preferred_element_type=jnp.float32))

    # One contiguous sigmoid slab for the 3 gates, then free vreg slices.
    sig = jax.nn.sigmoid(z[:, :3 * TN])
    in_gate = sig[:, 0 * TN:1 * TN]
    forget_gate = sig[:, 1 * TN:2 * TN]
    out_gate = sig[:, 2 * TN:3 * TN]
    in_transform = jnp.maximum(z[:, 3 * TN:4 * TN], z[:, 4 * TN:5 * TN])

    next_c = forget_gate * c_ref[...] + in_gate * in_transform
    nc_ref[...] = next_c
    nh_ref[...] = out_gate * jnp.tanh(next_c)
    # TODO(synk): training-mode dropout (stochastic masking via pltpu.prng_*)
    # is not implemented; eval-mode dropout is identity, so output == next_h.


def lstm_core_forward(xt, state, params):
    """Mirror of LSTMCore.forward (eval mode).

    xt:     (B, E) float32
    state:  tuple (h, c), each (1, B, R) float32
    params: dict with fused bf16 weights "wx" (nN, Ep, 5*TN) and
            "wh" (nN, Rh, 5*TN) as produced by fuse_params().

    Returns (output, (next_h[None], next_c[None])).
    """
    h_prev = state[0][-1]
    c_prev = state[1][-1]
    B, E = xt.shape
    R = h_prev.shape[-1]

    wx, wh = params["wx"], params["wh"]
    nN, Ep, five_tn = wx.shape
    TN = five_tn // 5
    Rh = wh.shape[1]          # round_up(R + 1, 8): R rows of Wh + 1 bias row
    Rp = nN * TN              # lane-padded hidden width

    # Batch padding / M-tile choice. 256 rows fills the 2x256x256 MXU on
    # v6e/v7x.  TODO(synk): pick TB=128 on v5e (4x128 MXU) via get_tpu_info().
    if B <= 256:
        Bp = _round_up(max(B, 8), 8)
        TB = Bp
    else:
        TB = 256
        Bp = _round_up(B, TB)

    # Small per-operand pads only (no (Bp, E+R) concat buffer).  bf16 operands.
    x_p = jnp.pad(xt.astype(jnp.float32),
                  ((0, Bp - B), (0, Ep - E))).astype(jnp.bfloat16)
    h_aug = jnp.concatenate(
        [h_prev.astype(jnp.float32), jnp.ones((B, 1), jnp.float32)], axis=-1)
    h_aug = jnp.pad(h_aug,
                    ((0, Bp - B), (0, Rh - (R + 1)))).astype(jnp.bfloat16)
    c_p = jnp.pad(c_prev.astype(jnp.float32), ((0, Bp - B), (0, Rp - R)))

    # Actual double-buffered per-step VMEM footprint; raise the scoped limit
    # accordingly (floor 32 MiB, cap 64 MiB for v7x).
    tile_bytes = (TB * Ep * 2 + TB * Rh * 2 + TB * TN * 4
                  + Ep * 5 * TN * 2 + Rh * 5 * TN * 2 + 2 * TB * TN * 4)
    vmem_limit = int(min(max(4 * tile_bytes, 32 << 20), 64 << 20))

    cost = pl.CostEstimate(
        flops=2 * Bp * (Ep + Rh) * 5 * Rp,
        transcendentals=7 * Bp * Rp,  # 3 sigmoids (exp+recip) + tanh, padded lanes
        bytes_accessed=(2 * Bp * (Ep + Rh)              # bf16 activations in
                        + 2 * nN * (Ep + Rh) * 5 * TN   # bf16 weights in
                        + 4 * 3 * Bp * Rp),             # f32 c in, h/c out
    )

    # TODO(synk): for recurrent decoding, fuse the timestep loop into this
    # kernel (grid=(T, ...) "arbitrary", carry h/c in VMEM scratch) so the
    # weight is DMA'd once per sequence instead of once per step.
    # TODO(synk): for very large E+R add a K-reduction grid axis with an f32
    # accumulator scratch; optionally fp8 weights on v7x.
    next_h, next_c = pl.pallas_call(
        _lstm_core_kernel,
        out_shape=(jax.ShapeDtypeStruct((Bp, Rp), jnp.float32),
                   jax.ShapeDtypeStruct((Bp, Rp), jnp.float32)),
        grid=(Bp // TB, nN),
        in_specs=[
            pl.BlockSpec((TB, Ep), lambda i, j: (i, 0)),            # x tile
            pl.BlockSpec((TB, Rh), lambda i, j: (i, 0)),            # [h | 1] tile
            pl.BlockSpec((TB, TN), lambda i, j: (i, j)),            # c tile
            pl.BlockSpec((1, Ep, 5 * TN), lambda i, j: (j, 0, 0)),  # Wx gate-band tile
            pl.BlockSpec((1, Rh, 5 * TN), lambda i, j: (j, 0, 0)),  # Wh+bias tile
        ],
        out_specs=(pl.BlockSpec((TB, TN), lambda i, j: (i, j)),
                   pl.BlockSpec((TB, TN), lambda i, j: (i, j))),
        input_output_aliases={2: 1},  # write next_c in place of the c buffer
        compiler_params=pltpu.CompilerParams(
            dimension_semantics=("parallel", "parallel"),
            vmem_limit_bytes=vmem_limit),
        cost_estimate=cost,
    )(x_p, h_aug, c_p, wx, wh)

    next_h = next_h[:B, :R]
    next_c = next_c[:B, :R]
    output = next_h  # eval-mode dropout == identity (no extra copy/store)
    new_state = (next_h[None, ...], next_c[None, ...])
    return output, new_state


def init_params(key, input_encoding_size, rnn_size):
    """Deterministic init matching nn.Linear shapes (stored transposed)."""
    E, R = input_encoding_size, rnn_size
    k1, k2, k3, k4 = jax.random.split(key, 4)
    bound_i = 1.0 / jnp.sqrt(E)
    bound_h = 1.0 / jnp.sqrt(R)
    return {
        "wi_t": jax.random.uniform(k1, (E, 5 * R), jnp.float32, -bound_i, bound_i),
        "bi":   jax.random.uniform(k2, (1, 5 * R), jnp.float32, -bound_i, bound_i),
        "wh_t": jax.random.uniform(k3, (R, 5 * R), jnp.float32, -bound_h, bound_h),
        "bh":   jax.random.uniform(k4, (1, 5 * R), jnp.float32, -bound_h, bound_h),
    }


def fuse_params(raw, input_encoding_size, rnn_size, tn=128):
    """Fuse i2h/h2h (+bias) into column-tiled, lane-aligned bf16 weights.

    Layout (done once, off the hot path):
      Rp = round_up(R, tn), nN = Rp // tn, Ep = round_up(E, 8), Rh = round_up(R+1, 8)
      wx[j, :E, g*tn : g*tn+w] = Wi_T[:, g*R + j*tn : g*R + j*tn + w]
      wh[j, :R, g*tn : g*tn+w] = Wh_T[:, ...same columns...]
      wh[j,  R, g*tn : g*tn+w] = bi + bh   (bias row; h operand carries a 1)
    so the (1, K, 5*tn) block for grid column j holds all 5 gate sub-bands of
    output lanes [j*tn, (j+1)*tn).  Zero padding keeps dead lanes/rows finite.

    NOTE: weight size, MXU MACs and EUP work scale with Rp, not R — choosing
    rnn_size as a multiple of 128 avoids a (Rp/R)x padding tax (4x at R=32).
    """
    E, R = input_encoding_size, rnn_size
    Rp = _round_up(R, tn)
    nN = Rp // tn
    Ep = _round_up(E, 8)
    Rh = _round_up(R + 1, 8)

    wx = jnp.zeros((nN, Ep, 5 * tn), jnp.float32)
    wh = jnp.zeros((nN, Rh, 5 * tn), jnp.float32)
    bsum = (raw["bi"] + raw["bh"])[0]  # (5R,)
    for j in range(nN):
        lo, hi = j * tn, min((j + 1) * tn, R)
        w = hi - lo
        for g in range(5):
            wx = wx.at[j, :E, g * tn:g * tn + w].set(
                raw["wi_t"][:, g * R + lo:g * R + hi])
            wh = wh.at[j, :R, g * tn:g * tn + w].set(
                raw["wh_t"][:, g * R + lo:g * R + hi])
            wh = wh.at[j, R, g * tn:g * tn + w].set(
                bsum[g * R + lo:g * R + hi])
    return {"wx": wx.astype(jnp.bfloat16), "wh": wh.astype(jnp.bfloat16)}


def _reference_forward(xt, state, raw):
    """Pure-JAX f32 reference (un-fused params) for correctness check."""
    h_prev = state[0][-1]
    c_prev = state[1][-1]
    R = h_prev.shape[-1]
    sums = xt @ raw["wi_t"] + raw["bi"] + h_prev @ raw["wh_t"] + raw["bh"]
    in_gate = jax.nn.sigmoid(sums[:, 0:R])
    forget_gate = jax.nn.sigmoid(sums[:, R:2 * R])
    out_gate = jax.nn.sigmoid(sums[:, 2 * R:3 * R])
    in_transform = jnp.maximum(sums[:, 3 * R:4 * R], sums[:, 4 * R:5 * R])
    next_c = forget_gate * c_prev + in_gate * in_transform
    next_h = out_gate * jnp.tanh(next_c)
    return next_h, next_h, next_c


if __name__ == "__main__":
    B = 4   # batch
    E = 32  # input_encoding_size
    R = 32  # rnn_size

    key = jax.random.PRNGKey(0)
    kp, kx, kh, kc = jax.random.split(key, 4)

    raw_params = init_params(kp, E, R)
    fused_params = fuse_params(raw_params, E, R)

    xt = jax.random.normal(kx, (B, E), jnp.float32)
    h0 = jax.random.normal(kh, (1, B, R), jnp.float32)
    c0 = jax.random.normal(kc, (1, B, R), jnp.float32)
    state = (h0, c0)

    fwd = jax.jit(lstm_core_forward)
    output, (nh, nc) = fwd(xt, state, fused_params)
    output = jax.block_until_ready(output)
    nh = jax.block_until_ready(nh)
    nc = jax.block_until_ready(nc)

    # Correctness vs. the f32 reference: tolerance covers bf16 rounding of the
    # weights/activations (accumulation itself is f32).
    ref_out, ref_h, ref_c = _reference_forward(xt, state, raw_params)
    assert jnp.allclose(output, ref_out, atol=5e-2, rtol=5e-2)
    assert jnp.allclose(nh[0], ref_h, atol=5e-2, rtol=5e-2)
    assert jnp.allclose(nc[0], ref_c, atol=5e-2, rtol=5e-2)
    assert output.shape == (B, R) and nh.shape == (1, B, R) and nc.shape == (1, B, R)

    print("KERNEL_OK")
</pallas_src>

<mosaic_0001>
module attributes {stable_mosaic.version = 11 : i64} {
  func.func @_lstm_core_kernel(%arg0: i32, %arg1: i32, %arg2: memref<8x32xbf16, #tpu.memory_space<vmem>>, %arg3: memref<8x40xbf16, #tpu.memory_space<vmem>>, %arg4: memref<8x128xf32, #tpu.memory_space<vmem>>, %arg5: memref<1x32x640xbf16, #tpu.memory_space<vmem>>, %arg6: memref<1x40x640xbf16, #tpu.memory_space<vmem>>, %arg7: memref<8x128xf32, #tpu.memory_space<vmem>>, %arg8: memref<8x128xf32, #tpu.memory_space<vmem>>) attributes {dimension_semantics = [#tpu.dimension_semantics<parallel>, #tpu.dimension_semantics<parallel>], iteration_bounds = array<i64: 1, 1>, scalar_prefetch = 0 : i64, scratch_operands = 0 : i64, tpu.core_type = #tpu.core_type<tc>, window_params = [{transform_indices = @transform_0, window_bounds = array<i64: 8, 32>}, {transform_indices = @transform_1, window_bounds = array<i64: 8, 40>}, {transform_indices = @transform_2, window_bounds = array<i64: 8, 128>}, {transform_indices = @transform_3, window_bounds = array<i64: 1, 32, 640>}, {transform_indices = @transform_4, window_bounds = array<i64: 1, 40, 640>}, {transform_indices = @transform_5, window_bounds = array<i64: 8, 128>}, {transform_indices = @transform_6, window_bounds = array<i64: 8, 128>}]} {
    %c0 = arith.constant 0 : index
    %c0_0 = arith.constant 0 : index
    %0 = vector.load %arg2[%c0, %c0_0] : memref<8x32xbf16, #tpu.memory_space<vmem>>, vector<8x32xbf16>
    %c0_1 = arith.constant 0 : index
    %c0_2 = arith.constant 0 : index
    %c0_3 = arith.constant 0 : index
    %1 = vector.load %arg5[%c0_1, %c0_2, %c0_3] : memref<1x32x640xbf16, #tpu.memory_space<vmem>>, vector<1x32x640xbf16>
    %2 = vector.shape_cast %1 : vector<1x32x640xbf16> to vector<32x640xbf16>
    %cst = arith.constant dense<0.000000e+00> : vector<8x640xf32>
    %3 = tpu.matmul %0, %2, %cst {dimension_numbers = #tpu.dot_dimension_numbers<[1], [0], [0], [1], [0, 0, 1, 1], [], []>} : vector<8x32xbf16>, vector<32x640xbf16>, vector<8x640xf32> -> vector<8x640xf32>
    %c0_4 = arith.constant 0 : index
    %c0_5 = arith.constant 0 : index
    %4 = vector.load %arg3[%c0_4, %c0_5] : memref<8x40xbf16, #tpu.memory_space<vmem>>, vector<8x40xbf16>
    %c0_6 = arith.constant 0 : index
    %c0_7 = arith.constant 0 : index
    %c0_8 = arith.constant 0 : index
    %5 = vector.load %arg6[%c0_6, %c0_7, %c0_8] : memref<1x40x640xbf16, #tpu.memory_space<vmem>>, vector<1x40x640xbf16>
    %6 = vector.shape_cast %5 : vector<1x40x640xbf16> to vector<40x640xbf16>
    %cst_9 = arith.constant dense<0.000000e+00> : vector<8x640xf32>
    %7 = tpu.matmul %4, %6, %cst_9 {dimension_numbers = #tpu.dot_dimension_numbers<[1], [0], [0], [1], [0, 0, 1, 1], [], []>} : vector<8x40xbf16>, vector<40x640xbf16>, vector<8x640xf32> -> vector<8x640xf32>
    %8 = arith.addf %3, %7 : vector<8x640xf32>
    %9 = vector.extract_strided_slice %8 {offsets = [0, 0], sizes = [8, 384], strides = [1, 1]} : vector<8x640xf32> to vector<8x384xf32>
    %10 = arith.negf %9 : vector<8x384xf32>
    %11 = math.exp %10 : vector<8x384xf32>
    %cst_10 = arith.constant 1.000000e+00 : f32
    %12 = vector.broadcast %cst_10 : f32 to vector<8x384xf32>
    %13 = arith.addf %12, %11 : vector<8x384xf32>
    %14 = arith.divf %12, %13 : vector<8x384xf32>
    %15 = vector.extract_strided_slice %14 {offsets = [0, 0], sizes = [8, 128], strides = [1, 1]} : vector<8x384xf32> to vector<8x128xf32>
    %16 = vector.extract_strided_slice %14 {offsets = [0, 128], sizes = [8, 128], strides = [1, 1]} : vector<8x384xf32> to vector<8x128xf32>
    %17 = vector.extract_strided_slice %14 {offsets = [0, 256], sizes = [8, 128], strides = [1, 1]} : vector<8x384xf32> to vector<8x128xf32>
    %18 = vector.extract_strided_slice %8 {offsets = [0, 384], sizes = [8, 128], strides = [1, 1]} : vector<8x640xf32> to vector<8x128xf32>
    %19 = vector.extract_strided_slice %8 {offsets = [0, 512], sizes = [8, 128], strides = [1, 1]} : vector<8x640xf32> to vector<8x128xf32>
    %20 = arith.maximumf %18, %19 : vector<8x128xf32>
    %c0_11 = arith.constant 0 : index
    %c0_12 = arith.constant 0 : index
    %21 = vector.load %arg4[%c0_11, %c0_12] : memref<8x128xf32, #tpu.memory_space<vmem>>, vector<8x128xf32>
    %22 = arith.mulf %16, %21 : vector<8x128xf32>
    %23 = arith.mulf %15, %20 : vector<8x128xf32>
    %24 = arith.addf %22, %23 : vector<8x128xf32>
    %c0_13 = arith.constant 0 : index
    %c0_14 = arith.constant 0 : index
    %25 = vector.load %arg8[%c0_13, %c0_14] : memref<8x128xf32, #tpu.memory_space<vmem>>, vector<8x128xf32>
    tpu.vector_store %arg8[%c0_13, %c0_14], %24 {strides = array<i32>} : memref<8x128xf32, #tpu.memory_space<vmem>>, vector<8x128xf32>,
    %26 = math.tanh %24 : vector<8x128xf32>
    %27 = arith.mulf %17, %26 : vector<8x128xf32>
    %c0_15 = arith.constant 0 : index
    %c0_16 = arith.constant 0 : index
    %28 = vector.load %arg7[%c0_15, %c0_16] : memref<8x128xf32, #tpu.memory_space<vmem>>, vector<8x128xf32>
    tpu.vector_store %arg7[%c0_15, %c0_16], %27 {strides = array<i32>} : memref<8x128xf32, #tpu.memory_space<vmem>>, vector<8x128xf32>,
    return
  }
  func.func @transform_0(%arg0: i32, %arg1: i32) -> (i32, i32) {
    %c0_i32 = arith.constant 0 : i32
    %c0_i32_0 = arith.constant 0 : i32
    return %arg0, %c0_i32 : i32, i32
  }
  func.func @transform_1(%arg0: i32, %arg1: i32) -> (i32, i32) {
    %c0_i32 = arith.constant 0 : i32
    %c0_i32_0 = arith.constant 0 : i32
    return %arg0, %c0_i32 : i32, i32
  }
  func.func @transform_2(%arg0: i32, %arg1: i32) -> (i32, i32) {
    %c0_i32 = arith.constant 0 : i32
    return %arg0, %arg1 : i32, i32
  }
  func.func @transform_3(%arg0: i32, %arg1: i32) -> (i32, i32, i32) {
    %c0_i32 = arith.constant 0 : i32
    %c0_i32_0 = arith.constant 0 : i32
    %c0_i32_1 = arith.constant 0 : i32
    return %arg1, %c0_i32, %c0_i32_0 : i32, i32, i32
  }
  func.func @transform_4(%arg0: i32, %arg1: i32) -> (i32, i32, i32) {
    %c0_i32 = arith.constant 0 : i32
    %c0_i32_0 = arith.constant 0 : i32
    %c0_i32_1 = arith.constant 0 : i32
    return %arg1, %c0_i32, %c0_i32_0 : i32, i32, i32
  }
  func.func @transform_5(%arg0: i32, %arg1: i32) -> (i32, i32) {
    %c0_i32 = arith.constant 0 : i32
    return %arg0, %arg1 : i32, i32
  }
  func.func @transform_6(%arg0: i32, %arg1: i32) -> (i32, i32) {
    %c0_i32 = arith.constant 0 : i32
    return %arg0, %arg1 : i32, i32
  }
}

</mosaic_0001>

<bundles_post_ra>
// kernel: lstm_core_forward.1
= control target key start
LH: loop header
LB: loop body
LE: loop exit
PB: predicated region body
PF: predicated region fallthrough
CT: control target
= control target key end

     0   :  { %12 = vsyncpa [#allocation3], 0  ;;  %s780_s0 = inlined_call_operand.vmem [shape: bf16[8,32], index: 0, kind: input, shape index: {}]   ;;  %s781_s1 = inlined_call_operand.vmem [shape: bf16[8,40], index: 1, kind: input, shape index: {}]   ;;  %s782_s2 = inlined_call_operand.vmem [shape: f32[8,128], index: 2, kind: input, shape index: {}, may-alias: {2,6}]   ;;  %s783_s3 = inlined_call_operand.hbm [shape: bf16[1,32,640], index: 3, kind: input, shape index: {}]   ;;  %s784_s4 = inlined_call_operand.hbm [shape: bf16[1,40,640], index: 4, kind: input, shape index: {}]   ;;  %s785_s5 = inlined_call_operand.vmem [shape: f32[8,128], index: 5, kind: output, shape index: {0}]   ;;  %s786_s6 = inlined_call_operand.vmem [shape: f32[8,128], index: 6, kind: output, shape index: {1}, may-alias: {2,6}]  }
   0x1   :  { %13 = vsyncpa [#allocation5], 0  ;;  %s675_s21 = smov [#allocation2]   ;;  %s627_s25 = scalar_lea.hbm %s783_s3, 1280 }
   0x2   :  { %s25_s22 = sshll.u32 %s675_s21, 4  ;;  %p628_p0 = scmp.ne.s32.totalorder %s783_s3, %s627_s25  ;;  %s26_s22 = int_to_ptr.vmem [resolvable:$true] %s25_s22 }
   0x3   :  { %p631_p1 = scmp.lt.u32.totalorder %s627_s25, %s783_s3 }
   0x5   :  { %p633_p2 = pnand %p631_p1, %p628_p0 }
   0x7   :  { %636 = shalt.err (!%p633_p2)
}
   0x8   :  { %s637_s30 = scalar_lea.vmem %s26_s22, 1280  ;;  %p642_p4 = scmp.lt.s32.totalorder %s26_s22, %s26_s22 }
   0x9   :  { %p638_p3 = scmp.ne.s32.totalorder %s26_s22, %s637_s30  ;;  %p643_p5 = scmp.lt.s32.totalorder %s637_s30, %s637_s30 }
   0xb   :  { %p644_p6 = por %p643_p5, %p642_p4 }
   0xd   :  { %p645_p7 = pnand %p644_p6, %p638_p3 }
   0xf   :  { %648 = shalt.err (!%p645_p7)
}
  0x10   :  { %s676_s7 = smov 320   ;;  %s677_s8 = smov 20  }
  0x11   :  { %31 = dma.hbm_to_vmem [thread:$0]  %s783_s3, 1280, %s26_s22, [#allocation3], %s676_s7, %s676_s7, %s677_s8  }
  0x12   :  { %s678_s11 = smov [#allocation4]   ;;  %s649_s15 = scalar_lea.hbm %s784_s4, 1600 }
  0x13   :  { %s37_s12 = sshll.u32 %s678_s11, 4  ;;  %p650_p8 = scmp.ne.s32.totalorder %s784_s4, %s649_s15  ;;  %s38_s12 = int_to_ptr.vmem [resolvable:$true] %s37_s12 }
  0x14   :  { %p653_p9 = scmp.lt.u32.totalorder %s649_s15, %s784_s4 }
  0x16   :  { %p655_p10 = pnand %p653_p9, %p650_p8 }
  0x18   :  { %658 = shalt.err (!%p655_p10)
}
  0x19   :  { %s659_s20 = scalar_lea.vmem %s38_s12, 1600  ;;  %p664_p12 = scmp.lt.s32.totalorder %s38_s12, %s38_s12 }
  0x1a   :  { %p660_p11 = scmp.ne.s32.totalorder %s38_s12, %s659_s20  ;;  %p665_p13 = scmp.lt.s32.totalorder %s659_s20, %s659_s20 }
  0x1c   :  { %p666_p0 = por %p665_p13, %p664_p12 }
  0x1e   :  { %p667_p1 = pnand %p666_p0, %p660_p11 }
  0x20   :  { %670 = shalt.err (!%p667_p1)
}
  0x21   :  { %43 = dma.hbm_to_vmem [thread:$0]  %s784_s4, 1600, %s38_s12, [#allocation5], %s676_s7, %s676_s7, %s677_s8  }
  0x22   :  { %671 = dma.done.wait [#allocation3], 1280  }
  0x23   :  { %672 = vsyncadd [#allocation3], 4294966016 }
  0x24   :  { %673 = dma.done.wait [#allocation5], 1600  }
  0x25   :  { %674 = vsyncadd [#allocation5], 4294965696  ;;  %v679_v0 = vmov 0.0   ;;  %vm680_vm0 = vmmov 0   ;;  %v681_v1 = vmov 0   ;;  %v77_v8 = vld [vmem:[#allocation4 + $0x50] sm:$0xff] }
  0x26   :  { %545 = vmatprep.subr.bf16.mxu0 %v679_v0  ;;  %551 = vmatprep.mubr.msk.bf16.mxu0 %vm680_vm0, %v679_v0  ;;  %v580_v2 = vld [vmem:[#allocation4 + $0x4] ss:$20 sps:$4 sm:$0xff]   ;;  %v583_v4 = vld [vmem:[#allocation4] ss:$20 sps:$4 sm:$0xff]   ;;  %v587_v7 = vld [vmem:[#allocation4 + $0x28] ss:$20 sps:$4 sm:$0xff]   ;;  %v513_v9 = vcombine.high %v77_v8, %v77_v8  ;;  %v512_v11 = vcombine.low %v77_v8, %v77_v8 }
  0x27   :  { %197 = vmatprep.mubr.bf16.mxu1 %v681_v1  ;;  %v582_v3 = vld [vmem:[#allocation4 + $0x10] ss:$20 sps:$4 sm:$0xff]   ;;  %165 = vmatprep.subr.bf16.mxu1 %v580_v2  ;;  %v584_v5 = vld [vmem:[#allocation4 + $0x2c] ss:$20 sps:$4 sm:$0xff]   ;;  %vm149_vm1 = vcmask 1043456   ;;  %vm145_vm2 = vcmask 326656  }
  0x28   :  { %546 = vmatpush3.bf16.msra.mxu0 %v582_v3  ;;  %166 = vmatpush1.bf16.msra.mxu1 %v583_v4  ;;  %v586_v6 = vld [vmem:[#allocation4 + $0x38] ss:$20 sps:$4 sm:$0xff]   ;;  %v589_v10 = vld [vmem:[#allocation4 + $0x60] ss:$0 sps:$4 sm:$0xff]   ;;  %v593_v13 = vld [vmem:[#allocation2 + $0x4] ss:$20 sps:$4 sm:$0xff]  }
  0x29   :  { %547 = vmatprep.subr.bf16.mxu0 %v679_v0  ;;  %167 = vmatprep.subr.bf16.mxu1 %v584_v5  ;;  %v163_v12 = vsel %vm149_vm1, %v589_v10, 0  ;;  %v151_v14 = vsel %vm149_vm1, %v512_v11, 0  ;;  %v596_v15 = vld [vmem:[#allocation4 + $0xc] ss:$20 sps:$4 sm:$0xff]   ;;  %v64_v16 = vld [vmem:[%s781_s1] sm:$0xf] }
  0x2a   :  { %v591_v17 = vld [vmem:[#allocation2] ss:$20 sps:$4 sm:$0xff]   ;;  %v594_v18 = vld [vmem:[#allocation4 + $0x8] ss:$20 sps:$4 sm:$0xff]   ;;  %v597_v22 = vld [vmem:[#allocation2 + $0x28] ss:$20 sps:$4 sm:$0xff]  }
  0x2b   :  { %v599_v19 = vld [vmem:[#allocation2 + $0x2c] ss:$20 sps:$4 sm:$0xff]   ;;  %v602_v20 = vld [vmem:[#allocation4 + $0x34] ss:$20 sps:$4 sm:$0xff]   ;;  %vm339_vm3 = vcmask 261120  }
  0x2c   :  { %548 = vmatpush3.bf16.msra.mxu0 %v586_v6  ;;  %168 = vmatpush1.bf16.msra.mxu1 %v587_v7  ;;  %v78_v21 = vld [vmem:[#allocation4 + $0x58] sm:$0xff]  ;;  %v600_v23 = vld [vmem:[#allocation4 + $0x30] ss:$20 sps:$4 sm:$0xff]   ;;  %v604_v27 = vld [vmem:[#allocation2 + $0x10] ss:$20 sps:$4 sm:$0xff]  }
  0x2d   :  { %549 = vmatprep.subr.bf16.mxu0 %v679_v0  ;;  %517 = vmatprep.subr.msk.bf16.mxu1 %vm149_vm1, %v513_v9  ;;  %v515_v24 = vcombine.high %v78_v21, %v78_v21  ;;  %v514_v25 = vcombine.low %v78_v21, %v78_v21  ;;  %v51_v26 = vld [vmem:[%s780_s0] sm:$0xf]  ;;  %v606_v30 = vld [vmem:[#allocation2 + $0x38] ss:$20 sps:$4 sm:$0xff]   ;;  %v607_v31 = vld [vmem:[#allocation2 + $0x8] ss:$20 sps:$4 sm:$0xff]  }
  0x2e   :  { %v609_v29 = vld [vmem:[#allocation2 + $0xc] ss:$20 sps:$4 sm:$0xff]   ;;  %v612_v32 = vld [vmem:[#allocation2 + $0x34] ss:$20 sps:$4 sm:$0xff]   ;;  %v610_v33 = vld [vmem:[#allocation2 + $0x30] ss:$20 sps:$4 sm:$0xff]  }
  0x2f   :  { %v157_v28 = vsel %vm149_vm1, %v514_v25, 0  ;;  %v484_v60 = vld [vmem:[%s782_s2] sm:$0xff] }
  0x30   :  { %550 = vmatpush3.bf16.msra.mxu0 %v163_v12  ;;  %170 = vmatpush1.bf16.msra.mxu1 %v151_v14 }
  0x31   :  { %343 = vmatprep.subr.bf16.mxu0 %v593_v13  ;;  %206 = vmatprep.subr.bf16.mxu1 %v596_v15 }
  0x33   :  { %552 = vmatmul.mubr.msk.bf16.vlgmr.msra.gmra.mrb[0].mxu0 %vm145_vm2, %v64_v16  ;;  %518 = vmatmul.mubr.msk.bf16.vlgmr.msra.gmra.mrb[0].mxu1 %vm145_vm2, %v64_v16 }
  0x34   :  { %344 = vmatpush1.bf16.msra.mxu0 %v591_v17  ;;  %207 = vmatpush1.bf16.msra.mxu1 %v594_v18 }
  0x35   :  { %345 = vmatprep.subr.bf16.mxu0 %v599_v19  ;;  %208 = vmatprep.subr.bf16.mxu1 %v602_v20 }
  0x36   :  { %375 = vmatprep.mubr.bf16.mxu0 %v681_v1  ;;  %238 = vmatprep.mubr.bf16.mxu1 %v681_v1 }
  0x38   :  { %346 = vmatpush1.bf16.msra.mxu0 %v597_v22  ;;  %209 = vmatpush1.bf16.msra.mxu1 %v600_v23 }
  0x39   :  { %555 = vmatprep.subr.bf16.mxu0 %v679_v0  ;;  %519 = vmatprep.subr.msk.bf16.mxu1 %vm149_vm1, %v515_v24 }
  0x3b   :  { %532 = vmatmul.mubr.msk.bf16.vlgmr.msra.gmra.mrb[4].mxu0 %vm339_vm3, %v51_v26 }
  0x3c   :  { %556 = vmatpush3.bf16.msra.mxu0 %v604_v27  ;;  %559 = vmatprep.mubr.msk.bf16.mxu0 %vm680_vm0, %v679_v0 }
  0x3d   :  { %211 = vmatpush1.bf16.msra.mxu1 %v157_v28  ;;  %557 = vmatprep.subr.bf16.mxu0 %v679_v0 }
  0x3e   :  { %384 = vmatprep.subr.bf16.mxu1 %v609_v29 }
  0x40   :  { %520 = vmatmul.mubr.msk.bf16.vlgmr.msra.gmra.mrb[4].mxu1 %vm145_vm2, %v64_v16  ;;  %558 = vmatpush3.bf16.msra.mxu0 %v606_v30 }
  0x41   :  { %385 = vmatpush1.bf16.msra.mxu1 %v607_v31  ;;  %416 = vmatprep.mubr.bf16.mxu1 %v681_v1 }
  0x42   :  { %386 = vmatprep.subr.bf16.mxu1 %v612_v32 }
  0x43   :  { %560 = vmatmul.mubr.msk.bf16.vlgmr.msra.gmra.mrb[0].mxu0 %vm339_vm3, %v51_v26 }
  0x45   :  { %387 = vmatpush1.bf16.msra.mxu1 %v610_v33 }
  0x4c   :  { %533 = vmatmul.mubr.msk.bf16.vlgmr.msra.gmra.mrb[4].mxu1 %vm339_vm3, %v51_v26 }
 0x106   :  { %v199_v34 = vpop.f32.mrb[0].mxu1 }
 0x107   :  { %v201_v35 = vpop.f32.mrb[1].mxu1 }
 0x108   :  { %v203_v36 = vpop.f32.mrb[2].mxu1 }
 0x109   :  { %v204_v37 = vpop.f32.mrb[3].mxu1 }
 0x10e   :  { %v377_v38 = vpop.f32.mrb[4].mxu0 }
 0x10f   :  { %v378_v39 = vadd.f32 %v377_v38, %v199_v34  ;;  %v379_v40 = vpop.f32.mrb[5].mxu0 }
 0x110   :  { %v380_v41 = vadd.f32 %v379_v40, %v201_v35  ;;  %v381_v42 = vpop.f32.mrb[6].mxu0 }
 0x111   :  { %v535_v43 = vmul.f32 -1.442695, %v378_v39  ;;  %v382_v44 = vpop.f32.mrb[7].mxu0 }
 0x112   :  { %v536_v45 = vmul.f32 -1.442695, %v380_v41 }
 0x113   :  { %613 = vpow2.f32 %v535_v43 }
 0x114   :  { %615 = vpow2.f32 %v536_v45 }
 0x116   :  { %v459_v46 = vpop.f32.mrb[0].mxu0 }
 0x117   :  { %v561_v47 = vpop.f32.mrb[1].mxu0 }
 0x118   :  { %v462_v48 = vpop.f32.mrb[2].mxu0 }
 0x119   :  { %v562_v49 = vpop.f32.mrb[3].mxu0 }
 0x11d   :  { %v614_v50 = vpop.eup %613 }
 0x11e   :  { %v616_v51 = vpop.eup %615  ;;  %v474_v52 = vadd.f32 1.0, %v614_v50 }
 0x11f   :  { %v475_v53 = vadd.f32 1.0, %v616_v51  ;;  %v418_v54 = vpop.f32.mrb[4].mxu1 }
 0x120   :  { %617 = vrcp.f32 %v474_v52  ;;  %v537_v55 = vmul.f32 -1.442695, %v418_v54  ;;  %v420_v56 = vpop.f32.mrb[5].mxu1 }
 0x121   :  { %619 = vrcp.f32 %v475_v53  ;;  %v483_v57 = vmax.f32 %v420_v56, %v459_v46  ;;  %v422_v58 = vpop.f32.mrb[6].mxu1 }
 0x122   :  { %621 = vpow2.f32 %v537_v55  ;;  %v423_v59 = vpop.f32.mrb[7].mxu1 }
 0x12a   :  { %v618_v61 = vpop.eup %617 }
 0x12b   :  { %v620_v62 = vpop.eup %619  ;;  %v486_v63 = vmul.f32 %v618_v61, %v483_v57 }
 0x12c   :  { %v622_v0 = vpop.eup %621  ;;  %v485_v1 = vmul.f32 %v620_v62, %v484_v60 }
 0x12d   :  { %v476_v2 = vadd.f32 1.0, %v622_v0 }
 0x12e   :  { %v487_v3 = vadd.f32 %v486_v63, %v485_v1 }
 0x12f   :  { %623 = vrcp.f32 %v476_v2 }
 0x130   :  { %488 = vst [vmem:[%s786_s6] sm:$0xff] %v487_v3  ;;  %625 = vtanh.f32 %v487_v3 }
 0x139   :  { %v624_v4 = vpop.eup %623 }
 0x13a   :  { %v626_v5 = vpop.eup %625 }
 0x13b   :  { %v490_v6 = vmul.f32 %v626_v5, %v624_v4 }
 0x13d   :  { %491 = vst [vmem:[%s785_s5] sm:$0xff] %v490_v6 }
 0x13e   :  { %500 = vsyncpa [#allocation3], 1 }
 0x13f   :  { %501 = vsyncpa [#allocation5], 1 }

</bundles_post_ra>
